<compile_context>
chip_gen: v7x
topology: tpu7x:2x2x1
jax: 0.10.0
libtpu: 0.0.40
codegen_flags: <defaults>
</compile_context>

<pallas_src>
import math

import numpy as np
import jax
import jax.numpy as jnp
from jax.experimental import pallas as pl
from jax.experimental.pallas import tpu as pltpu


# ----------------------------- small helpers --------------------------------
def _round_up(x, m):
    return (x + m - 1) // m * m


# -----------------------------------------------------------------------------
# Parameter construction (mirrors TensorRingLinear.__init__ / generate_node_shapes)
# -----------------------------------------------------------------------------
def generate_node_shapes(input_shape, output_shape, rank_shape):
    input_num = len(input_shape)
    nodes_num = len(rank_shape)
    tr_line = list(rank_shape) + [rank_shape[0]]
    whole = list(input_shape) + list(output_shape)
    shapes = []
    for i in range(nodes_num):
        left, right, mid = tr_line[i], tr_line[i + 1], whole[i]
        if i == 0:
            shapes.append((left * right, mid))
        elif i < input_num:
            shapes.append((right, mid * left))
        elif i < nodes_num - 1:
            shapes.append((right * mid, left))
        else:
            shapes.append((mid, right * left))
    return shapes


def init_params(key, input_shape, output_shape, rank_shape, output_size, bias=True):
    """Kaiming-normal-style init (fan_in = shape[1]); bias zeros (matches module)."""
    node_shapes = generate_node_shapes(input_shape, output_shape, rank_shape)
    weights = []
    keys = jax.random.split(key, len(node_shapes))
    for idx, shape in enumerate(node_shapes):
        gain = math.sqrt(2.0) if idx == len(node_shapes) - 1 else 1.0  # relu / linear
        std = gain / math.sqrt(shape[1])
        weights.append(std * jax.random.normal(keys[idx], shape, jnp.float32))
    b = jnp.zeros((output_size,), jnp.float32) if bias else None
    return weights, b


# -----------------------------------------------------------------------------
# Faithful per-node reference (pure jnp) + init-time ring pre-contraction
# -----------------------------------------------------------------------------
def _permuted_input_view(inputs, input_shape):
    input_num = len(input_shape)
    res = inputs.reshape(-1, *input_shape)
    perm = [0] + [input_num - i for i in range(input_num)]
    return jnp.transpose(res, perm)


def tensor_ring_reference(inputs, weights, bias, input_shape, output_shape, rank_shape):
    """Exact jnp replica of TensorRingLinear.forward (per-node contraction)."""
    batch = inputs.shape[0]
    input_num = len(input_shape)
    nodes_num = len(rank_shape)
    tr_line = list(rank_shape) + [rank_shape[0]]
    res = _permuted_input_view(inputs, input_shape)
    for i in range(nodes_num):
        w = weights[i]
        k = w.shape[1]
        left, right = tr_line[i], tr_line[i + 1]
        if i == 0:
            res = res.reshape(-1, k) @ w.T
            res = res.reshape(batch, -1, left)
            res = jnp.transpose(res, (0, 2, 1))
        elif i < input_num:
            res = res.reshape(-1, k) @ w.T
        elif i < nodes_num - 1:
            res = res.reshape(-1, k) @ w.T
        else:
            res = res.reshape(batch, right, -1, left)
            res = jnp.transpose(res, (0, 2, 1, 3))
            res = res.reshape(-1, k) @ w.T
            res = res.reshape(batch, -1)
    if bias is not None:
        res = res + bias[None, :]
    return res


def precontract_ring(weights, input_shape, output_shape, rank_shape):
    """Init-time parameter prep: merge the ring cores into two dense factors
    A:(input_size, R) and B:(R, output_size) so the forward is
        out = (x @ A) @ B + bias
    Both chains of the original tensor_contract are linear maps; their matrices
    are extracted by pushing identity batches through a faithful replica of the
    original reshape/permute/linear ops (exactly reproduces the index ordering).
    This is batch-independent and runs once per parameter set."""
    input_num = len(input_shape)
    nodes_num = len(rank_shape)
    tr_line = list(rank_shape) + [rank_shape[0]]
    input_size = int(np.prod(input_shape))
    output_size = int(np.prod(output_shape))

    def input_chain(res, batch):
        res = _permuted_input_view(res, input_shape)
        for i in range(input_num):
            w = weights[i]
            k = w.shape[1]
            left = tr_line[i]
            res = res.reshape(-1, k) @ w.T
            if i == 0:
                res = res.reshape(batch, -1, left)
                res = jnp.transpose(res, (0, 2, 1))
        return res

    def output_chain(res, batch):
        for i in range(input_num, nodes_num):
            w = weights[i]
            k = w.shape[1]
            left, right = tr_line[i], tr_line[i + 1]
            if i < nodes_num - 1:
                res = res.reshape(-1, k) @ w.T
            else:
                res = res.reshape(batch, right, -1, left)
                res = jnp.transpose(res, (0, 2, 1, 3))
                res = res.reshape(-1, k) @ w.T
                res = res.reshape(batch, -1)
        return res

    A = input_chain(jnp.eye(input_size, dtype=jnp.float32), input_size)
    A = A.reshape(input_size, -1)                         # (input_size, R)
    R = A.shape[1]
    B = output_chain(jnp.eye(R, dtype=jnp.float32), R)    # (R, output_size)
    assert B.shape == (R, output_size), B.shape
    return A, B


# -----------------------------------------------------------------------------
# Fused Pallas forward kernel:  out_tile = (x_tile @ A) @ B + bias
# -----------------------------------------------------------------------------
def _tr_fused_kernel(x_ref, a_ref, b_ref, bias_ref, o_ref):
    # Two chained MXU matmuls; the (TM, R) intermediate stays in f32 on-chip.
    mid = jnp.dot(x_ref[...], a_ref[...], preferred_element_type=jnp.float32)
    acc = jnp.dot(mid, b_ref[...], preferred_element_type=jnp.float32)
    acc = acc + bias_ref[...]                 # bias fused into the epilogue (VPU)
    o_ref[...] = acc.astype(o_ref.dtype)      # single cast at the final store


def _choose_tile_m(batch, input_size, output_size, max_tile=512,
                   vmem_budget_bytes=8 << 20):
    """Largest tile (multiple of 8) whose double-buffered x/out tiles stay well
    inside a conservative VMEM budget that is valid on v5e/v6e and on v7x
    (which only has 64 MiB physical / 32 MiB default-scoped VMEM)."""
    tile = max_tile
    row_bytes = 4 * (input_size + output_size)
    while tile > 8 and 2 * 2 * tile * row_bytes > vmem_budget_bytes:
        tile //= 2
    return max(8, min(tile, _round_up(batch, 8)))


def tensor_ring_forward(x, A, B, bias, *, tile_m=None):
    batch, input_size = x.shape
    R = A.shape[1]
    output_size = B.shape[1]
    assert A.shape[0] == input_size and B.shape == (R, output_size)

    if tile_m is None:
        tile_m = _choose_tile_m(batch, input_size, output_size)
    padded = _round_up(batch, tile_m)
    if padded != batch:
        x = jnp.pad(x, ((0, padded - batch), (0, 0)))
    grid = (padded // tile_m,)

    bias_vec = bias if bias is not None else jnp.zeros((output_size,), jnp.float32)
    bias_row = bias_vec.reshape(1, output_size).astype(jnp.float32)

    flops = 2 * padded * input_size * R + 2 * padded * R * output_size
    bytes_accessed = 4 * (padded * input_size + input_size * R
                          + R * output_size + output_size + padded * output_size)

    out = pl.pallas_call(
        _tr_fused_kernel,
        out_shape=jax.ShapeDtypeStruct((padded, output_size), x.dtype),
        grid_spec=pltpu.PrefetchScalarGridSpec(
            num_scalar_prefetch=0,
            grid=grid,
            in_specs=[
                pl.BlockSpec((tile_m, input_size), lambda i: (i, 0)),   # x tile
                pl.BlockSpec((input_size, R), lambda i: (0, 0)),        # A (resident)
                pl.BlockSpec((R, output_size), lambda i: (0, 0)),       # B (resident)
                pl.BlockSpec((1, output_size), lambda i: (0, 0)),       # bias (resident)
            ],
            out_specs=pl.BlockSpec((tile_m, output_size), lambda i: (i, 0)),
        ),
        compiler_params=pltpu.CompilerParams(
            dimension_semantics=("parallel",),      # batch tiles; both TCs on v7x
            vmem_limit_bytes=32 * 1024 * 1024,      # safe on v5e/v6e/v7x
        ),
        cost_estimate=pl.CostEstimate(
            flops=flops, transcendentals=0, bytes_accessed=bytes_accessed),
    )(x, A, B, bias_row)
    return out[:batch]


# -----------------------------------------------------------------------------
if __name__ == "__main__":
    # Shapes consistent with the module's constraints:
    #   input_size  = prod(input_shape)  = 4 * 8 = 32
    #   output_size = prod(output_shape) = 4 * 4 = 16
    #   len(rank_shape) = len(input_shape) + len(output_shape) = 4
    batch = 2
    input_shape = [4, 8]
    output_shape = [4, 4]
    rank_shape = [2, 3, 2, 3]
    input_size = int(np.prod(input_shape))
    output_size = int(np.prod(output_shape))

    key = jax.random.PRNGKey(0)
    k_param, k_x = jax.random.split(key)
    weights, bias = init_params(k_param, input_shape, output_shape, rank_shape,
                                output_size, bias=True)
    x = jax.random.normal(k_x, (batch, input_size), jnp.float32)

    # Init-time parameter prep (runs once; XLA glue, not per-forward work).
    A, B = precontract_ring(weights, input_shape, output_shape, rank_shape)

    out = tensor_ring_forward(x, A, B, bias)
    out = jax.block_until_ready(out)

    ref = tensor_ring_reference(x, weights, bias, input_shape, output_shape, rank_shape)
    assert out.shape == (batch, output_size), out.shape
    np.testing.assert_allclose(np.asarray(out), np.asarray(ref), rtol=1e-3, atol=1e-3)

    print("KERNEL_OK")
</pallas_src>

<mosaic_0001>
module attributes {stable_mosaic.version = 11 : i64} {
  func.func @_tr_fused_kernel(%arg0: i32, %arg1: memref<8x32xf32, #tpu.memory_space<vmem>>, %arg2: memref<32x4xf32, #tpu.memory_space<vmem>>, %arg3: memref<4x16xf32, #tpu.memory_space<vmem>>, %arg4: memref<1x16xf32, #tpu.memory_space<vmem>>, %arg5: memref<8x16xf32, #tpu.memory_space<vmem>>) attributes {dimension_semantics = [#tpu.dimension_semantics<parallel>], iteration_bounds = array<i64: 1>, scalar_prefetch = 0 : i64, scratch_operands = 0 : i64, tpu.core_type = #tpu.core_type<tc>, window_params = [{transform_indices = @transform_0, window_bounds = array<i64: 8, 32>}, {pipeline_mode = #tpu.pipeline_mode<synchronous>, transform_indices = @transform_1, window_bounds = array<i64: 32, 4>}, {pipeline_mode = #tpu.pipeline_mode<synchronous>, transform_indices = @transform_2, window_bounds = array<i64: 4, 16>}, {pipeline_mode = #tpu.pipeline_mode<synchronous>, transform_indices = @transform_3, window_bounds = array<i64: 1, 16>}, {transform_indices = @transform_4, window_bounds = array<i64: 8, 16>}]} {
    %c0 = arith.constant 0 : index
    %c0_0 = arith.constant 0 : index
    %0 = vector.load %arg1[%c0, %c0_0] : memref<8x32xf32, #tpu.memory_space<vmem>>, vector<8x32xf32>
    %c0_1 = arith.constant 0 : index
    %c0_2 = arith.constant 0 : index
    %1 = vector.load %arg2[%c0_1, %c0_2] : memref<32x4xf32, #tpu.memory_space<vmem>>, vector<32x4xf32>
    %cst = arith.constant dense<0.000000e+00> : vector<8x4xf32>
    %2 = tpu.matmul %0, %1, %cst {dimension_numbers = #tpu.dot_dimension_numbers<[1], [0], [0], [1], [0, 0, 1, 1], [], []>} : vector<8x32xf32>, vector<32x4xf32>, vector<8x4xf32> -> vector<8x4xf32>
    %c0_3 = arith.constant 0 : index
    %c0_4 = arith.constant 0 : index
    %3 = vector.load %arg3[%c0_3, %c0_4] : memref<4x16xf32, #tpu.memory_space<vmem>>, vector<4x16xf32>
    %cst_5 = arith.constant dense<0.000000e+00> : vector<8x16xf32>
    %4 = tpu.matmul %2, %3, %cst_5 {dimension_numbers = #tpu.dot_dimension_numbers<[1], [0], [0], [1], [0, 0, 1, 1], [], []>} : vector<8x4xf32>, vector<4x16xf32>, vector<8x16xf32> -> vector<8x16xf32>
    %c0_6 = arith.constant 0 : index
    %c0_7 = arith.constant 0 : index
    %5 = vector.load %arg4[%c0_6, %c0_7] : memref<1x16xf32, #tpu.memory_space<vmem>>, vector<1x16xf32>
    %6 = vector.broadcast %5 : vector<1x16xf32> to vector<8x16xf32>
    %7 = arith.addf %4, %6 : vector<8x16xf32>
    %c0_8 = arith.constant 0 : index
    %c0_9 = arith.constant 0 : index
    %8 = vector.load %arg5[%c0_8, %c0_9] : memref<8x16xf32, #tpu.memory_space<vmem>>, vector<8x16xf32>
    tpu.vector_store %arg5[%c0_8, %c0_9], %7 {strides = array<i32>} : memref<8x16xf32, #tpu.memory_space<vmem>>, vector<8x16xf32>,
    return
  }
  func.func @transform_0(%arg0: i32) -> (i32, i32) {
    %c0_i32 = arith.constant 0 : i32
    %c0_i32_0 = arith.constant 0 : i32
    return %arg0, %c0_i32 : i32, i32
  }
  func.func @transform_1(%arg0: i32) -> (i32, i32) {
    %c0_i32 = arith.constant 0 : i32
    %c0_i32_0 = arith.constant 0 : i32
    %c0_i32_1 = arith.constant 0 : i32
    return %c0_i32, %c0_i32_0 : i32, i32
  }
  func.func @transform_2(%arg0: i32) -> (i32, i32) {
    %c0_i32 = arith.constant 0 : i32
    %c0_i32_0 = arith.constant 0 : i32
    %c0_i32_1 = arith.constant 0 : i32
    return %c0_i32, %c0_i32_0 : i32, i32
  }
  func.func @transform_3(%arg0: i32) -> (i32, i32) {
    %c0_i32 = arith.constant 0 : i32
    %c0_i32_0 = arith.constant 0 : i32
    %c0_i32_1 = arith.constant 0 : i32
    return %c0_i32, %c0_i32_0 : i32, i32
  }
  func.func @transform_4(%arg0: i32) -> (i32, i32) {
    %c0_i32 = arith.constant 0 : i32
    %c0_i32_0 = arith.constant 0 : i32
    return %arg0, %c0_i32 : i32, i32
  }
}

</mosaic_0001>

<bundles_post_ra>
// kernel: tpu_custom_call.1
= control target key start
LH: loop header
LB: loop body
LE: loop exit
PB: predicated region body
PF: predicated region fallthrough
CT: control target
= control target key end

     0   :  { %v260_v3 = vmov 0.0|0.0   ;;  %vm261_vm0 = vmmov 0   ;;  %v262_v6 = vmov 0.0   ;;  %s322_s0 = inlined_call_operand.vmem [shape: f32[8,32], index: 0, kind: input, shape index: {}]   ;;  %s323_s1 = inlined_call_operand.vmem [shape: f32[32,4], index: 1, kind: input, shape index: {}]   ;;  %s324_s2 = inlined_call_operand.vmem [shape: f32[4,16], index: 2, kind: input, shape index: {}]   ;;  %s325_s3 = inlined_call_operand.vmem [shape: f32[1,16], index: 3, kind: input, shape index: {}]   ;;  %s326_s4 = inlined_call_operand.hbm [shape: f32[8,16], index: 4, kind: output, shape index: {}]  }
   0x1   :  { %v19_v0 = vld [vmem:[%s323_s1] sm:$0xff]  ;;  %v20_v1 = vld [vmem:[%s323_s1 + $0x8] sm:$0xff]  ;;  %v21_v2 = vld [vmem:[%s323_s1 + $0x10] sm:$0xff]  ;;  %226 = vmatprep.subr.bf16.mxu0 %v260_v3  ;;  %218 = vmatprep.mubr.msk.f32.mxu0 %vm261_vm0, %v262_v6 }
   0x2   :  { %v227_v4 = vpack.c.bf16 %v20_v1, %v19_v0  ;;  %v22_v5 = vld [vmem:[%s323_s1 + $0x18] sm:$0xff] }
   0x3   :  { %9 = vsyncpa [#allocation3], 0  ;;  %221 = vmatprep.subr.mxu1 %v262_v6  ;;  %223 = vmatprep.mubr.msk.f32.mxu1 %vm261_vm0, %v262_v6  ;;  %v230_v7 = vpack.c.bf16 %v22_v5, %v21_v2  ;;  %v18_v8 = vld [vmem:[%s322_s0] sm:$0xff]  ;;  %vm23_vm1 = vcmask 261120   ;;  %vm109_vm2 = vcmask 1043456   ;;  %vm105_vm3 = vcmask 31744  }
   0x4   :  { %228 = vmatpush3.bf16.msra.mxu0 %v227_v4  ;;  %v97_v9 = vld [vmem:[%s324_s2] sm:$0xf]  ;;  %s263_s28 = smov [#allocation2]   ;;  %vm183_vm4 = vcmask 130048  }
   0x5   :  { %229 = vmatprep.subr.bf16.mxu0 %v260_v3  ;;  %222 = vmatpush3.msk.msra.mxu1 %vm109_vm2, %v97_v9  ;;  %v200_v12 = vld [vmem:[%s325_s3] ss:$0 sm:$0xff]  ;;  %s191_s29 = sshll.u32 %s263_s28, 4  ;;  %s192_s29 = int_to_ptr.vmem [resolvable:$true] %s191_s29 }
   0x6   :  { %s236_s0 = scalar_lea.vmem %s192_s29, 128  ;;  %p241_p1 = scmp.lt.s32.totalorder %s192_s29, %s192_s29 }
   0x7   :  { %p237_p0 = scmp.ne.s32.totalorder %s192_s29, %s236_s0  ;;  %p242_p2 = scmp.lt.s32.totalorder %s236_s0, %s236_s0 }
   0x8   :  { %231 = vmatpush3.bf16.msra.mxu0 %v230_v7 }
   0x9   :  { %p243_p3 = por %p242_p2, %p241_p1 }
   0xb   :  { %219 = vmatmul.mubr.msk.f32.vlgmr.msra.gmra.mrb[0].mxu0 %vm23_vm1, %v18_v8  ;;  %p244_p4 = pnand %p243_p3, %p237_p0 }
  0xde   :  { %v93_v10 = vpop.f32.mrb[0].mxu0 }
  0xdf   :  { %v220_v11 = vpop.f32.mrb[1].mxu0  ;;  %224 = vmatmul.mubr.msk.f32.vlgmr.msra.gmra.mrb[0].mxu1 %vm105_vm3, %v93_v10 }
 0x1b2   :  { %v179_v13 = vpop.f32.mrb[0].mxu1 }
 0x1b3   :  { %v180_v14 = vadd.f32 %v200_v12, %v179_v13  ;;  %v225_v15 = vpop.f32.mrb[1].mxu1 }
 0x1b5   :  { %184 = vst.msk [vmem:[#allocation2] sm:$0xff] %vm183_vm4, %v180_v14 }
 0x1b6   :  { %247 = shalt.err (!%p244_p4)
}
 0x1b7   :  { %s248_s5 = scalar_lea.hbm %s326_s4, 128 }
 0x1b8   :  { %p249_p5 = scmp.ne.s32.totalorder %s326_s4, %s248_s5  ;;  %p252_p6 = scmp.lt.u32.totalorder %s248_s5, %s326_s4 }
 0x1ba   :  { %p254_p7 = pnand %p252_p6, %p249_p5 }
 0x1bc   :  { %257 = shalt.err (!%p254_p7)
}
 0x1bd   :  { %194 = dma.vmem_to_hbm [thread:$0]  %s192_s29, 128, %s326_s4, [#allocation3]  }
 0x1be   :  { %258 = dma.done.wait [#allocation3], 128  }
 0x1bf   :  { %259 = vsyncadd [#allocation3], 4294967168 }
 0x1c0   :  { %198 = vsyncpa [#allocation3], 1 }

</bundles_post_ra>
